<compile_context>
chip_gen: v7x
topology: tpu7x:2x2x1
jax: 0.10.0
libtpu: 0.0.40
codegen_flags: <defaults>
</compile_context>

<pallas_src>
import functools

import jax
import jax.numpy as jnp
import numpy as np
from jax import lax
from jax.experimental import pallas as pl
from jax.experimental.pallas import tpu as pltpu


def _round_up(n, m):
    return ((n + m - 1) // m) * m


def _embed_kernel(ids_ref, tok_ref, pos_ref, *rest, seq_tile, seq_padded, drop_prob):
    # ids_ref : SMEM (B*S_pad,) int32  (scalar prefetch)
    # tok_ref : VMEM (V, D) f32        (resident embedding table)
    # pos_ref : VMEM (TS, D) f32       (positional-encoding slab for this tile)
    # optional mask_ref : VMEM (1, TS, D) f32 uniforms in [0,1)
    # out_ref : VMEM (1, TS, D) f32
    # gather_ref : VMEM (TS, D) f32 scratch
    if drop_prob > 0.0:
        mask_ref, out_ref, gather_ref = rest
    else:
        out_ref, gather_ref = rest
        mask_ref = None

    b = pl.program_id(0)
    t = pl.program_id(1)
    base = b * seq_padded + t * seq_tile

    # Gather TS embedding rows from the VMEM-resident table using the
    # scalar-prefetched ids (VMEM->VMEM vector copies, no per-row HBM DMAs).
    def gather_row(r, carry):
        tok_id = ids_ref[base + r]
        gather_ref[pl.ds(r, 1), :] = tok_ref[pl.ds(tok_id, 1), :]
        return carry

    lax.fori_loop(0, seq_tile, gather_row, 0, unroll=seq_tile <= 16)

    val = gather_ref[...] + pos_ref[...]  # (TS, D) f32, single vectorized add

    if drop_prob > 0.0:
        # nn.Dropout training semantics: drop with prob p, scale kept by 1/(1-p).
        keep = mask_ref[0] >= jnp.float32(drop_prob)
        val = jnp.where(keep, val * jnp.float32(1.0 / (1.0 - drop_prob)), 0.0)

    out_ref[0] = val.astype(out_ref.dtype)


def transformer_embedding(x, tok_table, pos_table, *, drop_prob, rng_key=None,
                          seq_tile=256):
    """x: (B, S) int32 token ids -> (B, S, D) float32."""
    B, S = x.shape
    V, D = tok_table.shape
    max_len = pos_table.shape[0]
    if S > max_len:
        raise ValueError(f"sequence length {S} exceeds positional table {max_len}")

    drop_prob = float(drop_prob)
    if drop_prob >= 1.0:          # everything dropped; avoid 1/(1-p) overflow
        return jnp.zeros((B, S, D), jnp.float32)

    # Tile the (batch, seq) token space: TS tokens per grid step (multiple of 8).
    TS = min(int(seq_tile), _round_up(S, 8))
    S_pad = _round_up(S, TS)
    n_t = S_pad // TS

    ids = x.astype(jnp.int32)
    if S_pad != S:
        ids = jnp.pad(ids, ((0, 0), (0, S_pad - S)))      # pad with id 0 (valid row)
    ids_flat = ids.reshape(B * S_pad)

    pe = pos_table[:S].astype(jnp.float32)
    if S_pad != S:
        pe = jnp.pad(pe, ((0, S_pad - S), (0, 0)))

    use_dropout = drop_prob > 0.0
    in_specs = [
        # embedding table: constant index map -> DMA'd once, stays in VMEM
        pl.BlockSpec((V, D), lambda b, t, ids: (0, 0)),
        # positional encoding: contiguous (TS, D) slab for this sequence tile
        pl.BlockSpec((TS, D), lambda b, t, ids: (t, 0)),
    ]
    inputs = [tok_table.astype(jnp.float32), pe]
    if use_dropout:
        if rng_key is None:
            rng_key = jax.random.PRNGKey(0)
        mask = jax.random.uniform(rng_key, (B, S_pad, D), dtype=jnp.float32)
        in_specs.append(pl.BlockSpec((1, TS, D), lambda b, t, ids: (b, t, 0)))
        inputs.append(mask)

    kernel = functools.partial(_embed_kernel, seq_tile=TS, seq_padded=S_pad,
                               drop_prob=drop_prob)

    # Raise the scoped-VMEM limit only when the resident table + double-buffered
    # tiles actually need it (capped below v7x's 64 MiB physical VMEM).
    tile_bytes = TS * D * 4
    approx_vmem = (V * D * 4) + (S_pad * D * 4) \
        + (2 + (2 if use_dropout else 0) + 2) * tile_bytes + tile_bytes
    cparams = {"dimension_semantics": ("parallel", "parallel")}
    if approx_vmem > 16 * 1024 * 1024:
        cparams["vmem_limit_bytes"] = min(int(approx_vmem * 1.5), 48 * 1024 * 1024)

    out = pl.pallas_call(
        kernel,
        out_shape=jax.ShapeDtypeStruct((B, S_pad, D), jnp.float32),
        grid_spec=pltpu.PrefetchScalarGridSpec(
            num_scalar_prefetch=1,                 # token ids land in SMEM
            grid=(B, n_t),
            in_specs=in_specs,
            out_specs=pl.BlockSpec((1, TS, D), lambda b, t, ids: (b, t, 0)),
            scratch_shapes=[pltpu.VMEM((TS, D), jnp.float32)],
        ),
        compiler_params=pltpu.CompilerParams(**cparams),
    )(ids_flat, *inputs)

    return out[:, :S, :]


def make_pos_encoding(max_len, d_model):
    # Standard sinusoidal PE: PE[p, 2i] = sin(p / 10000^(2i/d)), PE[p, 2i+1] = cos(...)
    pos = np.arange(max_len, dtype=np.float32)[:, None]
    _2i = np.arange(0, d_model, 2, dtype=np.float32)
    denom = np.power(10000.0, _2i / d_model)
    enc = np.zeros((max_len, d_model), dtype=np.float32)
    enc[:, 0::2] = np.sin(pos / denom)
    enc[:, 1::2] = np.cos(pos / denom)
    return jnp.asarray(enc)


if __name__ == "__main__":
    B, S = 2, 8
    VOCAB, D_MODEL, MAX_LEN = 64, 32, 16
    DROP_PROB = 0.1

    key = jax.random.PRNGKey(0)
    k_emb, k_ids, k_drop = jax.random.split(key, 3)

    # nn.Embedding(vocab_size, d_model, padding_idx=1): row 1 is zeros.
    tok_table = jax.random.normal(k_emb, (VOCAB, D_MODEL), dtype=jnp.float32)
    tok_table = tok_table.at[1].set(0.0)
    pos_table = make_pos_encoding(MAX_LEN, D_MODEL)

    x = jax.random.randint(k_ids, (B, S), 0, VOCAB, dtype=jnp.int32)

    # Correctness with dropout disabled: must match the pure-JAX reference.
    out_nodrop = transformer_embedding(x, tok_table, pos_table, drop_prob=0.0)
    ref = jnp.take(tok_table, x, axis=0) + pos_table[:S][None, :, :]
    np.testing.assert_allclose(np.asarray(out_nodrop), np.asarray(ref),
                               rtol=1e-6, atol=1e-6)

    # Training-mode dropout: every kept element must equal ref / (1 - p).
    out = transformer_embedding(x, tok_table, pos_table,
                                drop_prob=DROP_PROB, rng_key=k_drop)
    jax.block_until_ready(out)
    assert out.shape == (B, S, D_MODEL)
    out_np = np.asarray(out)
    ref_scaled = np.asarray(ref) / (1.0 - DROP_PROB)
    kept = out_np != 0.0
    np.testing.assert_allclose(out_np[kept], ref_scaled[kept], rtol=1e-5, atol=1e-5)

    print("KERNEL_OK")
</pallas_src>

<mosaic_0001>
module attributes {stable_mosaic.version = 11 : i64} {
  func.func @_embed_kernel(%arg0: i32, %arg1: i32, %arg2: memref<16xi32, #tpu.memory_space<smem>>, %arg3: memref<64x32xf32, #tpu.memory_space<vmem>>, %arg4: memref<8x32xf32, #tpu.memory_space<vmem>>, %arg5: memref<1x8x32xf32, #tpu.memory_space<vmem>>, %arg6: memref<8x32xf32, #tpu.memory_space<vmem>>) attributes {dimension_semantics = [#tpu.dimension_semantics<parallel>, #tpu.dimension_semantics<parallel>], iteration_bounds = array<i64: 2, 1>, scalar_prefetch = 1 : i64, scratch_operands = 1 : i64, tpu.core_type = #tpu.core_type<tc>, window_params = [{pipeline_mode = #tpu.pipeline_mode<synchronous>, transform_indices = @transform_0, window_bounds = array<i64: 64, 32>}, {transform_indices = @transform_1, window_bounds = array<i64: 8, 32>}, {transform_indices = @transform_2, window_bounds = array<i64: 1, 8, 32>}]} {
    %c8_i32 = arith.constant 8 : i32
    %0 = arith.muli %arg0, %c8_i32 : i32
    %c8_i32_0 = arith.constant 8 : i32
    %1 = arith.muli %arg1, %c8_i32_0 : i32
    %2 = arith.addi %0, %1 : i32
    %c0_i32 = arith.constant 0 : i32
    %3 = arith.addi %2, %c0_i32 : i32
    %4 = arith.index_cast %3 : i32 to index
    %5 = memref.load %arg2[%4] : memref<16xi32, #tpu.memory_space<smem>>
    %6 = arith.index_cast %5 : i32 to index
    %c0 = arith.constant 0 : index
    %7 = vector.load %arg3[%6, %c0] : memref<64x32xf32, #tpu.memory_space<vmem>>, vector<1x32xf32>
    %8 = arith.index_cast %c0_i32 : i32 to index
    %c0_1 = arith.constant 0 : index
    %9 = vector.load %arg6[%8, %c0_1] : memref<8x32xf32, #tpu.memory_space<vmem>>, vector<1x32xf32>
    tpu.vector_store %arg6[%8, %c0_1], %7 {strides = array<i32>} : memref<8x32xf32, #tpu.memory_space<vmem>>, vector<1x32xf32>,
    %c1_i32 = arith.constant 1 : i32
    %10 = arith.addi %2, %c1_i32 : i32
    %11 = arith.index_cast %10 : i32 to index
    %12 = memref.load %arg2[%11] : memref<16xi32, #tpu.memory_space<smem>>
    %13 = arith.index_cast %12 : i32 to index
    %c0_2 = arith.constant 0 : index
    %14 = vector.load %arg3[%13, %c0_2] : memref<64x32xf32, #tpu.memory_space<vmem>>, vector<1x32xf32>
    %15 = arith.index_cast %c1_i32 : i32 to index
    %c0_3 = arith.constant 0 : index
    %16 = vector.load %arg6[%15, %c0_3] : memref<8x32xf32, #tpu.memory_space<vmem>>, vector<1x32xf32>
    tpu.vector_store %arg6[%15, %c0_3], %14 {strides = array<i32>} : memref<8x32xf32, #tpu.memory_space<vmem>>, vector<1x32xf32>,
    %c2_i32 = arith.constant 2 : i32
    %17 = arith.addi %2, %c2_i32 : i32
    %18 = arith.index_cast %17 : i32 to index
    %19 = memref.load %arg2[%18] : memref<16xi32, #tpu.memory_space<smem>>
    %20 = arith.index_cast %19 : i32 to index
    %c0_4 = arith.constant 0 : index
    %21 = vector.load %arg3[%20, %c0_4] : memref<64x32xf32, #tpu.memory_space<vmem>>, vector<1x32xf32>
    %22 = arith.index_cast %c2_i32 : i32 to index
    %c0_5 = arith.constant 0 : index
    %23 = vector.load %arg6[%22, %c0_5] : memref<8x32xf32, #tpu.memory_space<vmem>>, vector<1x32xf32>
    tpu.vector_store %arg6[%22, %c0_5], %21 {strides = array<i32>} : memref<8x32xf32, #tpu.memory_space<vmem>>, vector<1x32xf32>,
    %c3_i32 = arith.constant 3 : i32
    %24 = arith.addi %2, %c3_i32 : i32
    %25 = arith.index_cast %24 : i32 to index
    %26 = memref.load %arg2[%25] : memref<16xi32, #tpu.memory_space<smem>>
    %27 = arith.index_cast %26 : i32 to index
    %c0_6 = arith.constant 0 : index
    %28 = vector.load %arg3[%27, %c0_6] : memref<64x32xf32, #tpu.memory_space<vmem>>, vector<1x32xf32>
    %29 = arith.index_cast %c3_i32 : i32 to index
    %c0_7 = arith.constant 0 : index
    %30 = vector.load %arg6[%29, %c0_7] : memref<8x32xf32, #tpu.memory_space<vmem>>, vector<1x32xf32>
    tpu.vector_store %arg6[%29, %c0_7], %28 {strides = array<i32>} : memref<8x32xf32, #tpu.memory_space<vmem>>, vector<1x32xf32>,
    %c4_i32 = arith.constant 4 : i32
    %31 = arith.addi %2, %c4_i32 : i32
    %32 = arith.index_cast %31 : i32 to index
    %33 = memref.load %arg2[%32] : memref<16xi32, #tpu.memory_space<smem>>
    %34 = arith.index_cast %33 : i32 to index
    %c0_8 = arith.constant 0 : index
    %35 = vector.load %arg3[%34, %c0_8] : memref<64x32xf32, #tpu.memory_space<vmem>>, vector<1x32xf32>
    %36 = arith.index_cast %c4_i32 : i32 to index
    %c0_9 = arith.constant 0 : index
    %37 = vector.load %arg6[%36, %c0_9] : memref<8x32xf32, #tpu.memory_space<vmem>>, vector<1x32xf32>
    tpu.vector_store %arg6[%36, %c0_9], %35 {strides = array<i32>} : memref<8x32xf32, #tpu.memory_space<vmem>>, vector<1x32xf32>,
    %c5_i32 = arith.constant 5 : i32
    %38 = arith.addi %2, %c5_i32 : i32
    %39 = arith.index_cast %38 : i32 to index
    %40 = memref.load %arg2[%39] : memref<16xi32, #tpu.memory_space<smem>>
    %41 = arith.index_cast %40 : i32 to index
    %c0_10 = arith.constant 0 : index
    %42 = vector.load %arg3[%41, %c0_10] : memref<64x32xf32, #tpu.memory_space<vmem>>, vector<1x32xf32>
    %43 = arith.index_cast %c5_i32 : i32 to index
    %c0_11 = arith.constant 0 : index
    %44 = vector.load %arg6[%43, %c0_11] : memref<8x32xf32, #tpu.memory_space<vmem>>, vector<1x32xf32>
    tpu.vector_store %arg6[%43, %c0_11], %42 {strides = array<i32>} : memref<8x32xf32, #tpu.memory_space<vmem>>, vector<1x32xf32>,
    %c6_i32 = arith.constant 6 : i32
    %45 = arith.addi %2, %c6_i32 : i32
    %46 = arith.index_cast %45 : i32 to index
    %47 = memref.load %arg2[%46] : memref<16xi32, #tpu.memory_space<smem>>
    %48 = arith.index_cast %47 : i32 to index
    %c0_12 = arith.constant 0 : index
    %49 = vector.load %arg3[%48, %c0_12] : memref<64x32xf32, #tpu.memory_space<vmem>>, vector<1x32xf32>
    %50 = arith.index_cast %c6_i32 : i32 to index
    %c0_13 = arith.constant 0 : index
    %51 = vector.load %arg6[%50, %c0_13] : memref<8x32xf32, #tpu.memory_space<vmem>>, vector<1x32xf32>
    tpu.vector_store %arg6[%50, %c0_13], %49 {strides = array<i32>} : memref<8x32xf32, #tpu.memory_space<vmem>>, vector<1x32xf32>,
    %c7_i32 = arith.constant 7 : i32
    %52 = arith.addi %2, %c7_i32 : i32
    %53 = arith.index_cast %52 : i32 to index
    %54 = memref.load %arg2[%53] : memref<16xi32, #tpu.memory_space<smem>>
    %55 = arith.index_cast %54 : i32 to index
    %c0_14 = arith.constant 0 : index
    %56 = vector.load %arg3[%55, %c0_14] : memref<64x32xf32, #tpu.memory_space<vmem>>, vector<1x32xf32>
    %57 = arith.index_cast %c7_i32 : i32 to index
    %c0_15 = arith.constant 0 : index
    %58 = vector.load %arg6[%57, %c0_15] : memref<8x32xf32, #tpu.memory_space<vmem>>, vector<1x32xf32>
    tpu.vector_store %arg6[%57, %c0_15], %56 {strides = array<i32>} : memref<8x32xf32, #tpu.memory_space<vmem>>, vector<1x32xf32>,
    %c8_i32_16 = arith.constant 8 : i32
    %c0_17 = arith.constant 0 : index
    %c0_18 = arith.constant 0 : index
    %59 = vector.load %arg6[%c0_17, %c0_18] : memref<8x32xf32, #tpu.memory_space<vmem>>, vector<8x32xf32>
    %c0_19 = arith.constant 0 : index
    %c0_20 = arith.constant 0 : index
    %60 = vector.load %arg4[%c0_19, %c0_20] : memref<8x32xf32, #tpu.memory_space<vmem>>, vector<8x32xf32>
    %61 = arith.addf %59, %60 : vector<8x32xf32>
    %c0_21 = arith.constant 0 : index
    %c0_22 = arith.constant 0 : index
    %c0_23 = arith.constant 0 : index
    %62 = vector.load %arg5[%c0_21, %c0_22, %c0_23] : memref<1x8x32xf32, #tpu.memory_space<vmem>>, vector<1x8x32xf32>
    %63 = vector.shape_cast %62 : vector<1x8x32xf32> to vector<8x32xf32>
    %64 = vector.shape_cast %61 : vector<8x32xf32> to vector<1x8x32xf32>
    tpu.vector_store %arg5[%c0_21, %c0_22, %c0_23], %64 {strides = array<i32>} : memref<1x8x32xf32, #tpu.memory_space<vmem>>, vector<1x8x32xf32>,
    return
  }
  func.func @transform_0(%arg0: i32, %arg1: i32, %arg2: memref<16xi32, #tpu.memory_space<smem>>) -> (i32, i32) {
    %c0_i32 = arith.constant 0 : i32
    %c0_i32_0 = arith.constant 0 : i32
    %c0_i32_1 = arith.constant 0 : i32
    return %c0_i32, %c0_i32_0 : i32, i32
  }
  func.func @transform_1(%arg0: i32, %arg1: i32, %arg2: memref<16xi32, #tpu.memory_space<smem>>) -> (i32, i32) {
    %c0_i32 = arith.constant 0 : i32
    %c0_i32_0 = arith.constant 0 : i32
    return %arg1, %c0_i32 : i32, i32
  }
  func.func @transform_2(%arg0: i32, %arg1: i32, %arg2: memref<16xi32, #tpu.memory_space<smem>>) -> (i32, i32, i32) {
    %c0_i32 = arith.constant 0 : i32
    %c0_i32_0 = arith.constant 0 : i32
    return %arg0, %arg1, %c0_i32 : i32, i32, i32
  }
}

</mosaic_0001>

<bundles_post_ra>
// kernel: tpu_custom_call.1
= control target key start
LH: loop header
LB: loop body
LE: loop exit
PB: predicated region body
PF: predicated region fallthrough
CT: control target
= control target key end

     0   :  { %s631_s0 = inlined_call_operand.vmem [shape: s32[16], index: 0, kind: input, shape index: {}]   ;;  %s632_s1 = inlined_call_operand.vmem [shape: f32[64,32], index: 1, kind: input, shape index: {}]   ;;  %s633_s2 = inlined_call_operand.vmem [shape: f32[8,32], index: 2, kind: input, shape index: {}]   ;;  %s634_s3 = inlined_call_operand.hbm [shape: f32[2,8,32], index: 3, kind: output, shape index: {}]  }
   0x1   :  { %s8_s14 = sshll.u32 %s631_s0, 4  ;;  %s9_s14 = int_to_ptr.vmem [resolvable:$true] %s8_s14 }
   0x2   :  { %s369_s15 = scalar_lea.vmem %s9_s14, 16  ;;  %p374_p1 = scmp.lt.s32.totalorder %s9_s14, %s9_s14 }
   0x3   :  { %p370_p0 = scmp.ne.s32.totalorder %s9_s14, %s369_s15  ;;  %p375_p2 = scmp.lt.s32.totalorder %s369_s15, %s369_s15 }
   0x5   :  { %p376_p3 = por %p375_p2, %p374_p1 }
   0x7   :  { %p377_p4 = pnand %p376_p3, %p370_p0 }
   0x9   :  { %380 = shalt.err (!%p377_p4)  }
   0xa   :  { %s463_s16 = smov [#allocation4]  }
   0xb   :  { %11 = dma.vmem_to_smem %s9_s14, 16, %s463_s16, [#allocation3] }
   0xc   :  { %433 = dma.done.wait [#allocation3], 16 }
   0xd   :  { %434 = vsyncadd [#allocation3], 4294967280 }
   0xe   :  { %13 = sfence }
   0xf   :  { %14 = vsyncpa [#allocation6], 0 }
  0x10   :  { %16 = vsyncpa [#allocation6 + $0x1], 0  ;;  %s488_s17 = smov 0   ;;  %s490_s18 = smov 0  }
  0x11   :  { %s492_s0 = smov 0   ;;  %s494_s19 = smov 0  }
  0x12   :  { %s496_s20 = smov 0   ;;  %s498_s21 = smov 0  }
  0x13 LB: > { %637 = sst [smem:[#allocation9_spill]] %s457_s20  ;;  %s302_s22 = sadd.s32 4294967295, %s461_s21   ;;  %s461_s21 = sphi %s498_s21, %s22_s21   ;;  %s457_s20 = sphi %s496_s20, %s642_s20   ;;  %s453_s19 = sphi %s494_s19, %s641_s19   ;;  %s449_s0 = sphi %s492_s0, %s645_s0   ;;  %s445_s18 = sphi %s490_s18, %s644_s18   ;;  %s441_s17 = sphi %s488_s17, %s643_s17  }
  0x14   : > { %s303_s23 = sadd.s32 4294967294, %s461_s21   ;;  %s34_s24 = sadd.s32 1, %s457_s20 }
  0x15   : > { %s90_s25 = sadd.s32 1, %s449_s0  ;;  %p36_p5 = scmp.ge.s32.totalorder %s34_s24, 2 }
  0x16   : > { %p100_p6 = scmp.ne.s32.totalorder %s449_s0, %s445_s18  ;;  %p101_p7 = scmp.eq.s32.totalorder %s302_s22, 1 }
  0x17   : > { %p106_p8 = scmp.ne.s32.totalorder %s445_s18, %s441_s17  ;;  %s647_s24 = smov (%p36_p5, %s34_s24), 0 }
  0x18   : > { %638 = sst [smem:[#allocation10_spill]] %s647_s24  ;;  %p528_p9 = por %p101_p7, %p100_p6 }
  0x19   : > { %p107_p10 = scmp.eq.s32.totalorder %s303_s23, 1  ;;  %s85_s27 = ssub.s32 %s457_s20, %s647_s24 }
  0x1a   : > { %p306_p11 = scmp.ge.s32.totalorder %s461_s21, 1  ;;  %p88_p12 = scmp.eq.s32.totalorder %s85_s27, 0 }
  0x1b   : > { %p535_p13 = por %p107_p10, %p106_p8  ;;  %p135_p0 = scmp.lt.s32.totalorder %s461_s21, 3 }
  0x1c   : > { %s541_s29 = scalar_select %p88_p12, %s449_s0, %s90_s25  }
  0x1d   : > { %p136_p1 = pnand %p306_p11, %p135_p0 }
  0x1e   : > { %s308_s30 = sshll.u32 (!%p136_p1), %s453_s19, 3  ;;  %vm166_vm0 = vcmask (!%p136_p1), 253952   ;;  %s153_s27 = sand.u32 (!%p136_p1), 1, %s445_s18   ;;  %v204_v8 = vld [vmem:[%s633_s2] sm:$0xff] (!%p136_p1)  ;;  %vm206_vm1 = vcmask (!%p136_p1), 261120  }
  0x1f   : > { %139 = sbr.rel (%p136_p1) target bundleno = 71 (0x47), region = 28  ;;  %s163_s4 = sld [smem:[#allocation4 + %s308_s30]] (!%p136_p1) }
  0x20   : > { %s168_s5 = sadd.s32 (!%p136_p1), 1, %s308_s30  ;;  %s173_s7 = sadd.s32 (!%p136_p1), 2, %s308_s30 }
  0x21   : > { %s169_s6 = sld [smem:[#allocation4 + %s168_s5]] (!%p136_p1)  ;;  %s178_s9 = sadd.s32 (!%p136_p1), 3, %s308_s30 }
  0x22   : > { %s174_s8 = sld [smem:[#allocation4 + %s173_s7]] (!%p136_p1)  ;;  %s183_s11 = sadd.s32 (!%p136_p1), 4, %s308_s30 }
  0x23   : > { %s179_s10 = sld [smem:[#allocation4 + %s178_s9]] (!%p136_p1)  ;;  %s188_s13 = sadd.s32 (!%p136_p1), 5, %s308_s30 }
  0x24   : > { %s184_s12 = sld [smem:[#allocation4 + %s183_s11]] (!%p136_p1)  ;;  %s193_s15 = sadd.s32 (!%p136_p1), 6, %s308_s30 }
  0x25   : > { %s189_s14 = sld [smem:[#allocation4 + %s188_s13]] (!%p136_p1)  ;;  %s164_s23 = scalar_lea.vmem (!%p136_p1), %s632_s1, %s163_s4 }
  0x26   : > { %s194_s25 = sld [smem:[#allocation4 + %s193_s15]]  ;;  %v165_v0 = vld [vmem:[%s164_s23] sm:$0x1]  ;;  %s198_s7 = sadd.s32 7, %s308_s30 }
  0x27   : > { %s170_s5 = scalar_lea.vmem %s632_s1, %s169_s6  ;;  %167 = vst.msk [vmem:[#allocation2] sm:$0x1] %vm166_vm0, %v165_v0  ;;  %s199_s20 = sld [smem:[#allocation4 + %s198_s7]] }
  0x28   : > { %v171_v1 = vld [vmem:[%s170_s5] sm:$0x1]  ;;  %s175_s13 = scalar_lea.vmem %s632_s1, %s174_s8 }
  0x29   : > { %172 = vst.msk [vmem:[#allocation2 + $0x1] sm:$0x1] %vm166_vm0, %v171_v1  ;;  %v176_v2 = vld [vmem:[%s175_s13] sm:$0x1]  ;;  %s180_s16 = scalar_lea.vmem %s632_s1, %s179_s10  ;;  %s307_s13 = sshll.u32 %s153_s27, 3 }
  0x2a   : > { %177 = vst.msk [vmem:[#allocation2 + $0x2] sm:$0x1] %vm166_vm0, %v176_v2  ;;  %v181_v3 = vld [vmem:[%s180_s16] sm:$0x1]  ;;  %s185_s6 = scalar_lea.vmem %s632_s1, %s184_s12 }
  0x2b   : > { %182 = vst.msk [vmem:[#allocation2 + $0x3] sm:$0x1] %vm166_vm0, %v181_v3  ;;  %v186_v4 = vld [vmem:[%s185_s6] sm:$0x1]  ;;  %s190_s23 = scalar_lea.vmem %s632_s1, %s189_s14  ;;  %s155_s14 = scalar_lea.vmem [#allocation5], %s307_s13 }
  0x2c   : > { %187 = vst.msk [vmem:[#allocation2 + $0x4] sm:$0x1] %vm166_vm0, %v186_v4  ;;  %v191_v5 = vld [vmem:[%s190_s23] sm:$0x1]  ;;  %s195_s7 = scalar_lea.vmem %s632_s1, %s194_s25  ;;  %s223_s4 = sshll.u32 %s155_s14, 4  ;;  %s581_s4 = int_to_ptr.vmem [resolvable:$true] %s223_s4 }
  0x2d   : > { %192 = vst.msk [vmem:[#allocation2 + $0x5] sm:$0x1] %vm166_vm0, %v191_v5  ;;  %v196_v6 = vld [vmem:[%s195_s7] sm:$0x1]  ;;  %s200_s11 = scalar_lea.vmem %s632_s1, %s199_s20  ;;  %s310_s25 = sshll.u32 %s453_s19, 7 }
  0x2e   : > { %197 = vst.msk [vmem:[#allocation2 + $0x6] sm:$0x1] %vm166_vm0, %v196_v6  ;;  %v201_v7 = vld [vmem:[%s200_s11] sm:$0x1]  ;;  %s586_s30 = scalar_lea.hbm %s634_s3, %s310_s25  ;;  %s209_s6 = scalar_lea.sflag [#allocation6], %s153_s27 }
  0x2f   : > { %202 = vst.msk [vmem:[#allocation2 + $0x7] sm:$0x1] %vm166_vm0, %v201_v7  ;;  %s381_s22 = scalar_lea.vmem %s581_s4, 128  ;;  %s464_s19 = smov [#allocation5]  }
  0x30   : > { %p382_p2 = scmp.ne.s32.totalorder %s581_s4, %s381_s22  ;;  %s385_s8 = sshll.u32 %s464_s19, 4  ;;  %s386_s8 = int_to_ptr.vmem [resolvable:$false] %s385_s8 }
  0x31   : > { %s387_s23 = scalar_lea.vmem %s386_s8, 256  ;;  %p388_p5 = scmp.lt.s32.totalorder %s581_s4, %s386_s8 }
  0x32   : > { %p383_p3 = pnand %p382_p2, %p528_p9  ;;  %p389_p6 = scmp.lt.s32.totalorder %s387_s23, %s381_s22 }
  0x34   : > { %p384_p4 = pneg %p383_p3  ;;  %p390_p7 = por %p389_p6, %p388_p5 }
  0x36   : > { %v203_v9 = vld [vmem:[#allocation2] sm:$0xff]  ;;  %p391_p8 = pnand %p390_p7, %p384_p4 }
  0x37   : > { %v205_v10 = vadd.f32 %v204_v8, %v203_v9 }
  0x39   : > { %207 = vst.msk [vmem:[%s155_s14] sm:$0xff] %vm206_vm1, %v205_v10 }
  0x3a   : > { %394 = shalt.err (!%p391_p8)
}
  0x3b   : > { %s395_s27 = scalar_lea.hbm %s586_s30, 128  ;;  %s399_s7 = scalar_lea.hbm %s634_s3, 256 }
  0x3c   : > { %p396_p10 = scmp.ne.s32.totalorder %s586_s30, %s395_s27  ;;  %p400_p0 = scmp.lt.u32.totalorder %s586_s30, %s634_s3 }
  0x3d   : > { %p401_p1 = scmp.lt.u32.totalorder %s399_s7, %s395_s27  ;;  %p403_p3 = scmp.lt.u32.totalorder %s395_s27, %s586_s30 }
  0x3e   : > { %p397_p11 = pnand %p396_p10, %p528_p9 }
  0x3f   : > { %p402_p2 = por %p401_p1, %p400_p0 }
  0x40   : > { %p398_p12 = pneg %p397_p11 }
  0x41   : > { %p404_p4 = por %p403_p3, %p402_p2 }
  0x43   : > { %p405_p5 = pnand %p404_p4, %p398_p12 }
  0x45   : > { %408 = shalt.err (!%p405_p5)
}
  0x46   : > { %313 = dma.vmem_to_hbm [thread:$0]  (%p528_p9), %s581_s4, 128, %s586_s30, %s209_s6  }
  0x47 PF: > { %p319_p6 = scmp.ge.s32.totalorder %s461_s21, 2  ;;  %s235_s11 = sand.u32 1, %s441_s17  }
  0x48   : > { %s236_s13 = scalar_lea.sflag [#allocation6], %s235_s11 }
  0x49   : > { %p316_p7 = pnand %p319_p6, %p535_p13 }
  0x4b   : > { %436 = dma.done.wait (!%p316_p7), %s236_s13, 128  }
  0x4c   : > { %438 = vsyncadd (!%p316_p7), %s236_s13, 4294967168  ;;  %s22_s21 = sadd.s32 1, %s461_s21   ;;  %s641_s19 = sld [smem:[#allocation9_spill]] }
  0x4d   : > { %p19_p8 = scmp.ge.s32.totalorder %s22_s21, 4   ;;  %s642_s20 = sld [smem:[#allocation10_spill]] }
  0x4e   : > { %s643_s17 = smov %s445_s18  ;;  %s644_s18 = smov %s449_s0 }
  0x4f   : > { %s645_s0 = smov %s541_s29  ;;  %21 = sbr.rel (!%p19_p8) target bundleno = 19 (0x13), region = 71 }
  0x56   :  { %241 = vsyncpa [#allocation6], 1 }
  0x57   :  { %243 = vsyncpa [#allocation6 + $0x1], 1 }

</bundles_post_ra>
